<compile_context>
chip_gen: v5e
topology: v5e:2x2
jax: 0.10.0
libtpu: 0.0.40
codegen_flags: <defaults>
</compile_context>

<pallas_src>
import functools

import numpy as np
import jax
import jax.numpy as jnp
from jax.experimental import pallas as pl
from jax.experimental.pallas import tpu as pltpu

# ---- small, module-consistent hyperparameters ------------------------------
VOCAB = 50
EMB = 32                  # embedding_size (divisible by 16)
MAX_TOKENS = 16           # T  (must be > 8 so the final conv length stays positive)
NUM_CLASSES = 2
BATCH = 2

PAD = 3                   # 'same' padding for the k=7 conv
KS = (7, 5, 3, 3)         # conv kernel sizes
CH = (EMB, EMB // 2, EMB // 4, EMB // 8, EMB // 16)   # channel progression
LANE = 128                # TPU lane width


# ---- Pallas kernel (single invocation, whole batch, ONE MXU matmul) ----------
def _discriminator_kernel(tok_ref, w_ref, b_ref, wo_ref, bo_ref, out_ref,
                          *, slab, pool_len, k_eff, vpad):
    rows = tok_ref.shape[0]                 # B * slab
    bsz = out_ref.shape[0]
    assert w_ref.shape[0] == k_eff * vpad   # static sanity check

    # One-hot over the lane-padded vocab (kept f32: exact values, and f32 keeps the
    # sublane rolls on the well-supported 32-bit path).  Sentinel tokens (value == VOCAB)
    # hit an all-zero weight row, realising both conv1's 'same' padding and the slab
    # alignment padding.
    tok = tok_ref[...]                                            # (rows, 1) int32
    iota = jax.lax.broadcasted_iota(jnp.int32, (rows, vpad), 1)
    one_hot = (iota == tok).astype(jnp.float32)                   # (rows, vpad)

    # im2col taps: tap t of output row r reads input row r + t.  pltpu.roll keeps the
    # shift on the XLU (no misaligned-slice relayouts); wrapped rows only ever land in
    # dead slab rows because slab >= pool_len + k_eff - 1 (asserted in the wrapper).
    pieces = [one_hot]
    for t in range(1, k_eff):
        pieces.append(pltpu.roll(one_hot, shift=rows - t, axis=0))
    im = jnp.concatenate(pieces, axis=1).astype(jnp.bfloat16)     # (rows, k_eff*vpad)

    # ONE fused MXU matmul == embedding lookup + conv1..conv4 (weights composed offline,
    # f32 accumulation).
    y = jnp.dot(im, w_ref[...], preferred_element_type=jnp.float32) + b_ref[...]
    y = jnp.maximum(y, 0.0)                                        # F.relu (f32, VPU)

    # per-sample max-pool over the valid time rows (slab starts / lengths are 8-aligned)
    pooled = jnp.concatenate(
        [jnp.max(y[i * slab:i * slab + pool_len, :], axis=0, keepdims=True)
         for i in range(bsz)], axis=0)                             # (B, EMB//16)

    # tiny output linear on the VPU (2-deep contraction: not worth an MXU pass)
    logits = bo_ref[...] + pooled[:, 0:1] * wo_ref[0:1, :]
    for j in range(1, pooled.shape[1]):
        logits = logits + pooled[:, j:j + 1] * wo_ref[j:j + 1, :]

    out_ref[...] = logits                   # single (B, num_classes) store


# ---- one-time parameter preparation (hoisted out of the per-call path) -------
def prepare_params(params):
    """Compose the activation-free conv1..conv4 stack into a single k_eff=15 conv,
    fold the embedding table into it, lane-pad the vocab axis to 128, flatten for
    im2col (rows ordered (tap, vocab)) and cast the MXU operand to bf16.
    All composition is done in f32 on the host, once."""
    w = np.asarray(params["w1"], np.float32)              # (7, E, E/2), taps-first
    b = np.asarray(params["b1"], np.float32)[0]           # (E/2,)
    for i in (2, 3, 4):
        wi = np.asarray(params[f"w{i}"], np.float32)      # (ki, cin, cout)
        k1, cin, _ = w.shape
        k2, _, cout = wi.shape
        comp = np.zeros((k1 + k2 - 1, cin, cout), np.float32)
        for t1 in range(k1):
            for t2 in range(k2):
                comp[t1 + t2] += w[t1] @ wi[t2]
        w = comp
        b = b @ wi.sum(axis=0) + np.asarray(params[f"b{i}"], np.float32)[0]
    k_eff = w.shape[0]                                     # 15

    table = np.asarray(params["table"], np.float32)        # (V, E)
    V = table.shape[0]
    vpad = ((V + LANE - 1) // LANE) * LANE                 # 128: lane-aligned pieces
    wf = np.einsum("ve,kec->kvc", table, w)                # fold table: (k_eff, V, C)
    wf_pad = np.zeros((k_eff, vpad, wf.shape[2]), np.float32)
    wf_pad[:, :V, :] = wf                                  # sentinel / pad lanes -> 0
    w_fused = jnp.asarray(wf_pad.reshape(k_eff * vpad, wf.shape[2]),
                          dtype=jnp.bfloat16)

    return {
        "w_fused": w_fused,                                # (k_eff*vpad, E//16) bf16
        "b_fused": jnp.asarray(b.reshape(1, -1)),          # (1, E//16) f32
        "wo": params["wo"].astype(jnp.float32),            # (E//16, num_classes)
        "bo": params["bo"].astype(jnp.float32),            # (1, num_classes)
        "k_eff": int(k_eff),
        "vocab": int(V),
        "vpad": int(vpad),
    }


# ---- per-call wrapper ---------------------------------------------------------
def language_discriminator(tokens, prep):
    B, T = tokens.shape
    V, k_eff, vpad = prep["vocab"], prep["k_eff"], prep["vpad"]
    C = prep["bo"].shape[1]

    # per-sample row slab: T + 2*PAD rounded up to a multiple of 8 (sublane aligned)
    slab = ((T + 2 * PAD + 7) // 8) * 8
    right_pad = slab - T - PAD
    pool_len = T + 2 * PAD - (k_eff - 1)     # valid length after the fused conv (== T - 8)

    # static safety checks for the fragile layout invariants (per review)
    assert pool_len > 0, "max_tokens too small for the conv stack"
    assert slab % 8 == 0 and right_pad >= PAD
    # valid output rows never read across a slab boundary, and pltpu.roll wrap-around
    # only ever touches dead output rows:
    assert slab >= pool_len + (k_eff - 1)

    # per-call glue is only this pad + reshape (sentinel token == V => zero weight row)
    tok = jnp.pad(tokens.astype(jnp.int32), ((0, 0), (PAD, right_pad)),
                  constant_values=V)
    tok = tok.reshape(B * slab, 1)

    kernel = functools.partial(_discriminator_kernel, slab=slab,
                               pool_len=pool_len, k_eff=k_eff, vpad=vpad)
    vmem = pl.BlockSpec(memory_space=pltpu.MemorySpace.VMEM)

    # No grid: one kernel step, everything (< 1 MiB) resident in VMEM.
    # For large B, add grid=(B/TB,) + dimension_semantics=("parallel",) to use both
    # v7x TensorCores; at B=2 the per-step pipeline overhead would dominate.
    return pl.pallas_call(
        kernel,
        in_specs=[vmem] * 5,
        out_specs=vmem,
        out_shape=jax.ShapeDtypeStruct((B, C), jnp.float32),
    )(tok, prep["w_fused"], prep["b_fused"], prep["wo"], prep["bo"])


# ---- deterministic parameter init (xavier-uniform, PyTorch-style fans) --------
def init_params(key):
    ks = jax.random.split(key, 12)

    def xavier(k, shape, fan_in, fan_out):
        limit = float(np.sqrt(6.0 / (fan_in + fan_out)))
        return jax.random.uniform(k, shape, jnp.float32, -limit, limit)

    def bias(k, fan_in, cout):
        bound = float(1.0 / np.sqrt(fan_in))
        return jax.random.uniform(k, (1, cout), jnp.float32, -bound, bound)

    p = {"table": xavier(ks[0], (VOCAB, EMB), VOCAB, EMB)}
    # Note: PyTorch's padding_idx=0 row is overwritten by xavier_uniform_ in
    # initialize_weights(), so no zero row is needed here (forward semantics match).
    for i, (K, cin, cout) in enumerate(zip(KS, CH[:-1], CH[1:]), start=1):
        # stored as (K, Cin, Cout) == torch weight (Cout, Cin, K).transpose(2, 1, 0)
        p[f"w{i}"] = xavier(ks[2 * i - 1], (K, cin, cout), cin * K, cout * K)
        p[f"b{i}"] = bias(ks[2 * i], cin * K, cout)
    p["wo"] = xavier(ks[9], (CH[-1], NUM_CLASSES), CH[-1], NUM_CLASSES)
    p["bo"] = bias(ks[10], CH[-1], NUM_CLASSES)
    return p


# ---- pure-JAX reference for verification (layered, f32) -----------------------
def ref_forward(tokens, p):
    hp = jax.lax.Precision.HIGHEST
    x = p["table"][tokens]                                   # (B, T, E)
    x = jnp.pad(x, ((0, 0), (PAD, PAD), (0, 0)))             # conv1 'same'
    for i in range(1, 5):
        w, b = p[f"w{i}"], p[f"b{i}"]
        K = w.shape[0]
        Lout = x.shape[1] - K + 1
        acc = jnp.zeros((x.shape[0], Lout, w.shape[2]), jnp.float32) + b
        for k in range(K):
            acc = acc + jnp.einsum("blc,cd->bld", x[:, k:k + Lout], w[k],
                                   precision=hp)
        x = acc
    x = jax.nn.relu(x)
    x = jnp.max(x, axis=1)                                   # (B, E/16)
    return jnp.dot(x, p["wo"], precision=hp) + p["bo"]


if __name__ == "__main__":
    key = jax.random.PRNGKey(0)
    pkey, tkey = jax.random.split(key)
    params = init_params(pkey)
    prep = prepare_params(params)            # one-time offline weight composition / folding
    tokens = jax.random.randint(tkey, (BATCH, MAX_TOKENS), 0, VOCAB, dtype=jnp.int32)

    out = language_discriminator(tokens, prep)
    out = jax.block_until_ready(out)

    ref = ref_forward(tokens, params)
    assert out.shape == (BATCH, NUM_CLASSES)
    # tolerance accounts for the single bf16 cast of the f32-composed weights
    np.testing.assert_allclose(np.asarray(out), np.asarray(ref), rtol=3e-2, atol=3e-2)
    print("KERNEL_OK")
</pallas_src>

<mosaic_0001>
module attributes {stable_mosaic.version = 11 : i64} {
  func.func @_discriminator_kernel(%arg0: memref<48x1xi32, #tpu.memory_space<vmem>>, %arg1: memref<1920x2xbf16, #tpu.memory_space<vmem>>, %arg2: memref<1x2xf32, #tpu.memory_space<vmem>>, %arg3: memref<2x2xf32, #tpu.memory_space<vmem>>, %arg4: memref<1x2xf32, #tpu.memory_space<vmem>>, %arg5: memref<2x2xf32, #tpu.memory_space<vmem>>) attributes {dimension_semantics = [], scalar_prefetch = 0 : i64, scratch_operands = 0 : i64, tpu.core_type = #tpu.core_type<tc>} {
    %c0 = arith.constant 0 : index
    %c0_0 = arith.constant 0 : index
    %0 = vector.load %arg0[%c0, %c0_0] : memref<48x1xi32, #tpu.memory_space<vmem>>, vector<48x1xi32>
    %1 = tpu.iota {dimensions = array<i32: 1>} : vector<48x128xi32>
    %2 = vector.broadcast %0 : vector<48x1xi32> to vector<48x128xi32>
    %3 = arith.cmpi eq, %1, %2 : vector<48x128xi32>
    %4 = arith.extui %3 : vector<48x128xi1> to vector<48x128xi32>
    %5 = arith.sitofp %4 : vector<48x128xi32> to vector<48x128xf32>
    %c47_i32 = arith.constant 47 : i32
    %6 = tpu.dynamic_rotate %5 by %c47_i32 dim 0 : vector<48x128xf32>, i32 -> vector<48x128xf32>
    %c46_i32 = arith.constant 46 : i32
    %7 = tpu.dynamic_rotate %5 by %c46_i32 dim 0 : vector<48x128xf32>, i32 -> vector<48x128xf32>
    %c45_i32 = arith.constant 45 : i32
    %8 = tpu.dynamic_rotate %5 by %c45_i32 dim 0 : vector<48x128xf32>, i32 -> vector<48x128xf32>
    %c44_i32 = arith.constant 44 : i32
    %9 = tpu.dynamic_rotate %5 by %c44_i32 dim 0 : vector<48x128xf32>, i32 -> vector<48x128xf32>
    %c43_i32 = arith.constant 43 : i32
    %10 = tpu.dynamic_rotate %5 by %c43_i32 dim 0 : vector<48x128xf32>, i32 -> vector<48x128xf32>
    %c42_i32 = arith.constant 42 : i32
    %11 = tpu.dynamic_rotate %5 by %c42_i32 dim 0 : vector<48x128xf32>, i32 -> vector<48x128xf32>
    %c41_i32 = arith.constant 41 : i32
    %12 = tpu.dynamic_rotate %5 by %c41_i32 dim 0 : vector<48x128xf32>, i32 -> vector<48x128xf32>
    %c40_i32 = arith.constant 40 : i32
    %13 = tpu.dynamic_rotate %5 by %c40_i32 dim 0 : vector<48x128xf32>, i32 -> vector<48x128xf32>
    %c39_i32 = arith.constant 39 : i32
    %14 = tpu.dynamic_rotate %5 by %c39_i32 dim 0 : vector<48x128xf32>, i32 -> vector<48x128xf32>
    %c38_i32 = arith.constant 38 : i32
    %15 = tpu.dynamic_rotate %5 by %c38_i32 dim 0 : vector<48x128xf32>, i32 -> vector<48x128xf32>
    %c37_i32 = arith.constant 37 : i32
    %16 = tpu.dynamic_rotate %5 by %c37_i32 dim 0 : vector<48x128xf32>, i32 -> vector<48x128xf32>
    %c36_i32 = arith.constant 36 : i32
    %17 = tpu.dynamic_rotate %5 by %c36_i32 dim 0 : vector<48x128xf32>, i32 -> vector<48x128xf32>
    %c35_i32 = arith.constant 35 : i32
    %18 = tpu.dynamic_rotate %5 by %c35_i32 dim 0 : vector<48x128xf32>, i32 -> vector<48x128xf32>
    %c34_i32 = arith.constant 34 : i32
    %19 = tpu.dynamic_rotate %5 by %c34_i32 dim 0 : vector<48x128xf32>, i32 -> vector<48x128xf32>
    %20 = tpu.concatenate %5, %6, %7, %8, %9, %10, %11, %12, %13, %14, %15, %16, %17, %18, %19 in 1 : vector<48x128xf32>, vector<48x128xf32>, vector<48x128xf32>, vector<48x128xf32>, vector<48x128xf32>, vector<48x128xf32>, vector<48x128xf32>, vector<48x128xf32>, vector<48x128xf32>, vector<48x128xf32>, vector<48x128xf32>, vector<48x128xf32>, vector<48x128xf32>, vector<48x128xf32>, vector<48x128xf32> -> vector<48x1920xf32>
    %21 = arith.truncf %20 : vector<48x1920xf32> to vector<48x1920xbf16>
    %c0_1 = arith.constant 0 : index
    %c0_2 = arith.constant 0 : index
    %22 = vector.load %arg1[%c0_1, %c0_2] : memref<1920x2xbf16, #tpu.memory_space<vmem>>, vector<1920x2xbf16>
    %cst = arith.constant dense<0.000000e+00> : vector<48x2xf32>
    %23 = tpu.matmul %21, %22, %cst {dimension_numbers = #tpu.dot_dimension_numbers<[1], [0], [0], [1], [0, 0, 1, 1], [], []>} : vector<48x1920xbf16>, vector<1920x2xbf16>, vector<48x2xf32> -> vector<48x2xf32>
    %c0_3 = arith.constant 0 : index
    %c0_4 = arith.constant 0 : index
    %24 = vector.load %arg2[%c0_3, %c0_4] : memref<1x2xf32, #tpu.memory_space<vmem>>, vector<1x2xf32>
    %25 = vector.broadcast %24 : vector<1x2xf32> to vector<48x2xf32>
    %26 = arith.addf %23, %25 : vector<48x2xf32>
    %cst_5 = arith.constant 0.000000e+00 : f32
    %27 = vector.broadcast %cst_5 : f32 to vector<48x2xf32>
    %28 = arith.maximumf %26, %27 : vector<48x2xf32>
    %29 = vector.extract_strided_slice %28 {offsets = [0, 0], sizes = [8, 2], strides = [1, 1]} : vector<48x2xf32> to vector<8x2xf32>
    %cst_6 = arith.constant dense<0xFF800000> : vector<2xf32>
    %30 = vector.multi_reduction <maximumf>, %29, %cst_6 [0] : vector<8x2xf32> to vector<2xf32>
    %31 = vector.shape_cast %30 : vector<2xf32> to vector<1x2xf32>
    %32 = vector.extract_strided_slice %28 {offsets = [24, 0], sizes = [8, 2], strides = [1, 1]} : vector<48x2xf32> to vector<8x2xf32>
    %cst_7 = arith.constant dense<0xFF800000> : vector<2xf32>
    %33 = vector.multi_reduction <maximumf>, %32, %cst_7 [0] : vector<8x2xf32> to vector<2xf32>
    %34 = vector.shape_cast %33 : vector<2xf32> to vector<1x2xf32>
    %35 = tpu.concatenate %31, %34 in 0 : vector<1x2xf32>, vector<1x2xf32> -> vector<2x2xf32>
    %c0_8 = arith.constant 0 : index
    %c0_9 = arith.constant 0 : index
    %36 = vector.load %arg4[%c0_8, %c0_9] : memref<1x2xf32, #tpu.memory_space<vmem>>, vector<1x2xf32>
    %37 = vector.extract_strided_slice %35 {offsets = [0, 0], sizes = [2, 1], strides = [1, 1]} : vector<2x2xf32> to vector<2x1xf32>
    %c0_10 = arith.constant 0 : index
    %c0_11 = arith.constant 0 : index
    %38 = vector.load %arg3[%c0_10, %c0_11] : memref<2x2xf32, #tpu.memory_space<vmem>>, vector<1x2xf32>
    %39 = vector.broadcast %37 : vector<2x1xf32> to vector<2x2xf32>
    %40 = vector.broadcast %38 : vector<1x2xf32> to vector<2x2xf32>
    %41 = arith.mulf %39, %40 : vector<2x2xf32>
    %42 = vector.broadcast %36 : vector<1x2xf32> to vector<2x2xf32>
    %43 = arith.addf %42, %41 : vector<2x2xf32>
    %44 = vector.extract_strided_slice %35 {offsets = [0, 1], sizes = [2, 1], strides = [1, 1]} : vector<2x2xf32> to vector<2x1xf32>
    %c1 = arith.constant 1 : index
    %c0_12 = arith.constant 0 : index
    %45 = vector.load %arg3[%c1, %c0_12] : memref<2x2xf32, #tpu.memory_space<vmem>>, vector<1x2xf32>
    %46 = vector.broadcast %44 : vector<2x1xf32> to vector<2x2xf32>
    %47 = vector.broadcast %45 : vector<1x2xf32> to vector<2x2xf32>
    %48 = arith.mulf %46, %47 : vector<2x2xf32>
    %49 = arith.addf %43, %48 : vector<2x2xf32>
    %c0_13 = arith.constant 0 : index
    %c0_14 = arith.constant 0 : index
    %50 = vector.load %arg5[%c0_13, %c0_14] : memref<2x2xf32, #tpu.memory_space<vmem>>, vector<2x2xf32>
    tpu.vector_store %arg5[%c0_13, %c0_14], %49 {strides = array<i32>} : memref<2x2xf32, #tpu.memory_space<vmem>>, vector<2x2xf32>,
    return
  }
}

</mosaic_0001>

<bundles_post_ra>
// kernel: tpu_custom_call.1
= control target key start
LH: loop header
LB: loop body
LE: loop exit
PB: predicated region body
PF: predicated region fallthrough
CT: control target
= control target key end

     0   :  { %v2191_v2 = vmov 0   ;;  %s3122_s0 = inlined_call_operand.vmem [shape: s32[48,1], index: 0, kind: input, shape index: {}]   ;;  %s3123_s1 = inlined_call_operand.vmem [shape: bf16[1920,2], index: 1, kind: input, shape index: {}]   ;;  %s3124_s2 = inlined_call_operand.vmem [shape: f32[1,2], index: 2, kind: input, shape index: {}]   ;;  %s3125_s3 = inlined_call_operand.vmem [shape: f32[2,2], index: 3, kind: input, shape index: {}]   ;;  %s3126_s4 = inlined_call_operand.vmem [shape: f32[1,2], index: 4, kind: input, shape index: {}]   ;;  %s3127_s5 = inlined_call_operand.hbm [shape: f32[2,2], index: 5, kind: output, shape index: {}]  }
   0x1   :  { %v23_v0 = vld [vmem:[%s3122_s0 + $0x10] sm:$0xff]  ;;  %v21_v1 = vld [vmem:[%s3122_s0] sm:$0xff]  ;;  %2157 = vset.pattern.permute.xlu1 %v2191_v2  ;;  %2156 = vset.pattern.permute.xlu0 %v2191_v2  ;;  %v2030_v4 = vld [vmem:[%s3123_s1 + $0x38] sm:$0xff] }
   0x2   :  { %v25_v3 = vld [vmem:[%s3122_s0 + $0x20] sm:$0xff]  ;;  %36 = vperm.xlu1 %2157, %v23_v0   ;;  %30 = vperm.xlu0 %2156, %v21_v1   ;;  %v2029_v5 = vld [vmem:[%s3123_s1 + $0x30] sm:$0xff]  ;;  %v2038_v6 = vld [vmem:[%s3123_s1 + $0x78] sm:$0xff] }
   0x3   :  { %2158 = vset.pattern.permute.xlu2 %v2191_v2  ;;  %2143 = vmatpush.bf16.msra.mxu3 %v2030_v4  ;;  %v24_v7 = vld [vmem:[%s3122_s0 + $0x18] sm:$0xff]  ;;  %v22_v9 = vld [vmem:[%s3122_s0 + $0x8] sm:$0xff]  ;;  %v2037_v10 = vld [vmem:[%s3123_s1 + $0x70] sm:$0xff] }
   0x4   :  { %42 = vperm.xlu2 %2158, %v25_v3   ;;  %1167 = vmatpush.bf16.msra.mxu0 %v2030_v4  ;;  %v2046_v8 = vld [vmem:[%s3123_s1 + $0xb8] sm:$0xff]  ;;  %v2045_v11 = vld [vmem:[%s3123_s1 + $0xb0] sm:$0xff]  ;;  %v2028_v12 = vld [vmem:[%s3123_s1 + $0x28] sm:$0xff] }
   0x5   :  { %1187 = vmatpush.bf16.msra.mxu1 %v2038_v6  ;;  %1207 = vmatpush.bf16.msra.mxu2 %v2046_v8 }
   0x7   :  { %2144 = vmatpush.bf16.msra.mxu3 %v2029_v5 }
   0x8   :  { %10 = vsyncpa [#allocation3], 0  ;;  %v26_v13 = vld [vmem:[%s3122_s0 + $0x28] sm:$0xff]  ;;  %1168 = vmatpush.bf16.msra.mxu0 %v2029_v5  ;;  %v2027_v14 = vld [vmem:[%s3123_s1 + $0x20] sm:$0xff]  ;;  %v27_v36 = vlaneseq  ;;  %v2192_v50 = vmov 1.0|1.0  }
   0x9   :  { %1188 = vmatpush.bf16.msra.mxu1 %v2037_v10  ;;  %1208 = vmatpush.bf16.msra.mxu2 %v2045_v11  ;;  %v2026_v15 = vld [vmem:[%s3123_s1 + $0x18] sm:$0xff]  ;;  %v2025_v16 = vld [vmem:[%s3123_s1 + $0x10] sm:$0xff]  ;;  %v2024_v17 = vld [vmem:[%s3123_s1 + $0x8] sm:$0xff]  ;;  %v2193_v60 = vmov 0.0   ;;  %s2195_s17 = smov [#allocation2]   ;;  %s1516_s21 = sshll.u32 %s3127_s5, 4  ;;  %s1517_s21 = int_to_ptr.hbm [resolvable:$true] %s1516_s21 }
   0xa   :  { %39 = vperm.xlu1 %2157, %v24_v7   ;;  %33 = vperm.xlu0 %2156, %v22_v9   ;;  %v2023_v18 = vld [vmem:[%s3123_s1] sm:$0xff]  ;;  %v2054_v19 = vld [vmem:[%s3123_s1 + $0xf8] sm:$0xff]  ;;  %v2053_v20 = vld [vmem:[%s3123_s1 + $0xf0] sm:$0xff]  ;;  %v2345_v42 = vand.u32 127, %v27_v36  ;;  %v2383_v54 = vshrl.u32 %v27_v36, 7  ;;  %s1514_s18 = sshll.u32 %s2195_s17, 4  ;;  %s1515_s18 = int_to_ptr.vmem [resolvable:$true] %s1514_s18 }
   0xb   :  { %2145 = vmatpush.bf16.msra.mxu3 %v2028_v12  ;;  %v2036_v21 = vld [vmem:[%s3123_s1 + $0x68] sm:$0xff]  ;;  %v2035_v24 = vld [vmem:[%s3123_s1 + $0x60] sm:$0xff]  ;;  %v2034_v27 = vld [vmem:[%s3123_s1 + $0x58] sm:$0xff] }
   0xc   :  { %45 = vperm.xlu2 %2158, %v26_v13   ;;  %1169 = vmatpush.bf16.msra.mxu0 %v2028_v12  ;;  %v2044_v22 = vld [vmem:[%s3123_s1 + $0xa8] sm:$0xff]  ;;  %v2043_v25 = vld [vmem:[%s3123_s1 + $0xa0] sm:$0xff]  ;;  %v2042_v28 = vld [vmem:[%s3123_s1 + $0x98] sm:$0xff]  ;;  %vm73_vm6 = vcmp.lt.s32.totalorder %v2383_v54, 7  ;;  %vm86_vm7 = vcmp.lt.s32.totalorder %v2383_v54, 6  ;;  %vm99_vm8 = vcmp.lt.s32.totalorder %v2383_v54, 5 }
   0xd   :  { %v2052_v23 = vld [vmem:[%s3123_s1 + $0xe8] sm:$0xff]  ;;  %1189 = vmatpush.bf16.msra.mxu1 %v2036_v21  ;;  %1209 = vmatpush.bf16.msra.mxu2 %v2044_v22  ;;  %v2051_v26 = vld [vmem:[%s3123_s1 + $0xe0] sm:$0xff]  ;;  %v2050_v29 = vld [vmem:[%s3123_s1 + $0xd8] sm:$0xff]  ;;  %vm112_vm11 = vcmp.lt.s32.totalorder %v2383_v54, 4  ;;  %vm125_vm12 = vcmp.lt.s32.totalorder %v2383_v54, 3  ;;  %vm138_vm13 = vcmp.lt.s32.totalorder %v2383_v54, 2 }
   0xe   :  { %v2033_v30 = vld [vmem:[%s3123_s1 + $0x50] sm:$0xff]  ;;  %v2032_v33 = vld [vmem:[%s3123_s1 + $0x48] sm:$0xff]  ;;  %v2062_v38 = vld [vmem:[%s3123_s1 + $0x138] sm:$0xff] }
   0xf   :  { %2146 = vmatpush.bf16.msra.mxu3 %v2027_v14  ;;  %v2041_v31 = vld [vmem:[%s3123_s1 + $0x90] sm:$0xff]  ;;  %v2040_v34 = vld [vmem:[%s3123_s1 + $0x88] sm:$0xff]  ;;  %v2031_v39 = vld [vmem:[%s3123_s1 + $0x40] sm:$0xff] }
  0x10   :  { %1170 = vmatpush.bf16.msra.mxu0 %v2027_v14  ;;  %v2049_v32 = vld [vmem:[%s3123_s1 + $0xd0] sm:$0xff]  ;;  %v2048_v35 = vld [vmem:[%s3123_s1 + $0xc8] sm:$0xff]  ;;  %v2039_v40 = vld [vmem:[%s3123_s1 + $0x80] sm:$0xff] }
  0x11   :  { %1190 = vmatpush.bf16.msra.mxu1 %v2035_v24  ;;  %1210 = vmatpush.bf16.msra.mxu2 %v2043_v25  ;;  %v2047_v41 = vld [vmem:[%s3123_s1 + $0xc0] sm:$0xff]  ;;  %v2061_v43 = vld [vmem:[%s3123_s1 + $0x130] sm:$0xff]  ;;  %v2078_v44 = vld [vmem:[%s3123_s1 + $0x1b8] sm:$0xff] }
  0x12   :  { %v2060_v45 = vld [vmem:[%s3123_s1 + $0x128] sm:$0xff]  ;;  %v2070_v46 = vld [vmem:[%s3123_s1 + $0x178] sm:$0xff]  ;;  %v2077_v48 = vld [vmem:[%s3123_s1 + $0x1b0] sm:$0xff] }
  0x13   :  { %2147 = vmatpush.bf16.msra.mxu3 %v2026_v15  ;;  %v2069_v49 = vld [vmem:[%s3123_s1 + $0x170] sm:$0xff]  ;;  %v2059_v51 = vld [vmem:[%s3123_s1 + $0x120] sm:$0xff]  ;;  %v2058_v52 = vld [vmem:[%s3123_s1 + $0x118] sm:$0xff] }
  0x14   :  { %1171 = vmatpush.bf16.msra.mxu0 %v2026_v15  ;;  %v2076_v53 = vld [vmem:[%s3123_s1 + $0x1a8] sm:$0xff]  ;;  %v2057_v57 = vld [vmem:[%s3123_s1 + $0x110] sm:$0xff]  ;;  %v2086_v59 = vld [vmem:[%s3123_s1 + $0x1f8] sm:$0xff] }
  0x15   :  { %1191 = vmatpush.bf16.msra.mxu1 %v2034_v27  ;;  %1211 = vmatpush.bf16.msra.mxu2 %v2042_v28  ;;  %v2068_v58 = vld [vmem:[%s3123_s1 + $0x168] sm:$0xff]  ;;  %v2075_v62 = vld [vmem:[%s3123_s1 + $0x1a0] sm:$0xff]  ;;  %v2085_v3 = vld [vmem:[%s3123_s1 + $0x1f0] sm:$0xff] }
  0x16   :  { %v2056_v63 = vld [vmem:[%s3123_s1 + $0x108] sm:$0xff]  ;;  %v2067_v0 = vld [vmem:[%s3123_s1 + $0x160] sm:$0xff]  ;;  %v2074_v4 = vld [vmem:[%s3123_s1 + $0x198] sm:$0xff] }
  0x17   :  { %2148 = vmatpush.bf16.msra.mxu3 %v2025_v16  ;;  %v2055_v12 = vld [vmem:[%s3123_s1 + $0x100] sm:$0xff]  ;;  %v2084_v21 = vld [vmem:[%s3123_s1 + $0x1e8] sm:$0xff] }
  0x18   :  { %1172 = vmatpush.bf16.msra.mxu0 %v2025_v16 }
  0x19   :  { %1192 = vmatpush.bf16.msra.mxu1 %v2033_v30  ;;  %1212 = vmatpush.bf16.msra.mxu2 %v2041_v31 }
  0x1b   :  { %2149 = vmatpush.bf16.msra.mxu3 %v2024_v17 }
  0x1c   :  { %1173 = vmatpush.bf16.msra.mxu0 %v2024_v17 }
  0x1d   :  { %1193 = vmatpush.bf16.msra.mxu1 %v2032_v33  ;;  %1213 = vmatpush.bf16.msra.mxu2 %v2040_v34 }
  0x1f   :  { %2150 = vmatpush.bf16.msra.mxu3 %v2023_v18 }
  0x20   :  { %1174 = vmatpush.bf16.msra.mxu0 %v2023_v18 }
  0x21   :  { %1194 = vmatpush.bf16.msra.mxu1 %v2031_v39  ;;  %1214 = vmatpush.bf16.msra.mxu2 %v2039_v40  ;;  %v2066_v40 = vld [vmem:[%s3123_s1 + $0x158] sm:$0xff] }
  0x23   :  { %1227 = vmatpush.bf16.msrb.mxu3 %v2054_v19 }
  0x24   :  { %1247 = vmatpush.bf16.msrb.mxu0 %v2062_v38 }
  0x25   :  { %1287 = vmatpush.bf16.msrb.mxu2 %v2078_v44  ;;  %1267 = vmatpush.bf16.msrb.mxu1 %v2070_v46  ;;  %v2073_v46 = vld [vmem:[%s3123_s1 + $0x190] sm:$0xff] }
  0x27   :  { %1228 = vmatpush.bf16.msrb.mxu3 %v2053_v20 }
  0x28   :  { %1248 = vmatpush.bf16.msrb.mxu0 %v2061_v43 }
  0x29   :  { %1288 = vmatpush.bf16.msrb.mxu2 %v2077_v48  ;;  %1268 = vmatpush.bf16.msrb.mxu1 %v2069_v49 }
  0x2b   :  { %1229 = vmatpush.bf16.msrb.mxu3 %v2052_v23 }
  0x2c   :  { %1249 = vmatpush.bf16.msrb.mxu0 %v2060_v45 }
  0x2d   :  { %1289 = vmatpush.bf16.msrb.mxu2 %v2076_v53  ;;  %1269 = vmatpush.bf16.msrb.mxu1 %v2068_v58 }
  0x2f   :  { %1230 = vmatpush.bf16.msrb.mxu3 %v2051_v26 }
  0x30   :  { %1250 = vmatpush.bf16.msrb.mxu0 %v2059_v51 }
  0x31   :  { %1290 = vmatpush.bf16.msrb.mxu2 %v2075_v62  ;;  %1270 = vmatpush.bf16.msrb.mxu1 %v2067_v0 }
  0x33   :  { %1231 = vmatpush.bf16.msrb.mxu3 %v2050_v29 }
  0x34   :  { %1251 = vmatpush.bf16.msrb.mxu0 %v2058_v52 }
  0x35   :  { %1291 = vmatpush.bf16.msrb.mxu2 %v2074_v4  ;;  %1271 = vmatpush.bf16.msrb.mxu1 %v2066_v40  ;;  %v2064_v40 = vld [vmem:[%s3123_s1 + $0x148] sm:$0xff] }
  0x37   :  { %1232 = vmatpush.bf16.msrb.mxu3 %v2049_v32 }
  0x38   :  { %1252 = vmatpush.bf16.msrb.mxu0 %v2057_v57 }
  0x39   :  { %1292 = vmatpush.bf16.msrb.mxu2 %v2073_v46  ;;  %v2071_v46 = vld [vmem:[%s3123_s1 + $0x180] sm:$0xff] }
  0x3b   :  { %1233 = vmatpush.bf16.msrb.mxu3 %v2048_v35 }
  0x3c   :  { %1253 = vmatpush.bf16.msrb.mxu0 %v2056_v63 }
  0x3f   :  { %1234 = vmatpush.bf16.msrb.mxu3 %v2047_v41 }
  0x40   :  { %1254 = vmatpush.bf16.msrb.mxu0 %v2055_v12  ;;  %v2065_v12 = vld [vmem:[%s3123_s1 + $0x150] sm:$0xff] }
  0x41   :  { %1272 = vmatpush.bf16.msrb.mxu1 %v2065_v12 }
  0x45   :  { %1273 = vmatpush.bf16.msrb.mxu1 %v2064_v40 }
  0x5e   :  { %v2331_v37 = vpop.permute.xlu2 %42 }
  0x5f   :  { %vm51_vm0 = vcmp.eq.s32.totalorder %v2345_v42, %v2331_v37  ;;  %v2083_v37 = vld [vmem:[%s3123_s1 + $0x1e0] sm:$0xff] }
  0x60   :  { %v2400_v61 = vsel %vm51_vm0, 1.0, %v2193_v60 }
  0x61   :  { %v69_v7 = vrot.slane %v2400_v61, 1  ;;  %v84_v8 = vrot.slane %v2400_v61, 2  ;;  %v97_v9 = vrot.slane %v2400_v61, 3  ;;  %v110_v10 = vrot.slane %v2400_v61, 4 }
  0x62   :  { %v123_v11 = vrot.slane %v2400_v61, 5  ;;  %v136_v16 = vrot.slane %v2400_v61, 6 }
  0x66   :  { %v46_v47 = vpop.permute.xlu2 %45 }
  0x67   :  { %vm52_vm1 = vcmp.eq.s32.totalorder %v2345_v42, %v46_v47 }
  0x68   :  { %vm2015_vm2 = vmpackc.low %vm52_vm1, %vm51_vm0  ;;  %v2423_v2 = vsel %vm52_vm1, 1.0, %v2193_v60 }
  0x69   :  { %2016 = vmatmul.msk.bf16.vlgmr.msra.gmra.mxu3 %vm2015_vm2, %v2192_v50  ;;  %v70_v13 = vrot.slane %v2423_v2, 1  ;;  %v85_v14 = vrot.slane %v2423_v2, 2  ;;  %v98_v15 = vrot.slane %v2423_v2, 3  ;;  %v111_v22 = vrot.slane %v2423_v2, 4 }
  0x6a   :  { %1307 = vmatpush.bf16.msra.mxu3 %v2086_v59  ;;  %v124_v23 = vrot.slane %v2423_v2, 5  ;;  %v137_v63 = vrot.slane %v2423_v2, 6  ;;  %vm151_vm2 = vcmp.lt.s32.totalorder %v2383_v54, 1  ;;  %v2121_v54 = vld [vmem:[%s3123_s1 + $0x310] sm:$0xff] }
  0x6b   :  { %v2566_v57 = vsel %vm73_vm6, %v69_v7, %v70_v13  ;;  %v2583_v62 = vsel %vm86_vm7, %v84_v8, %v85_v14  ;;  %v2643_v12 = vsel %vm112_vm11, %v110_v10, %v111_v22 }
  0x6e   :  { %1308 = vmatpush.bf16.msra.mxu3 %v2085_v3 }
  0x72   :  { %1309 = vmatpush.bf16.msra.mxu3 %v2084_v21 }
  0x74   :  { %v2385_v55 = vpop.permute.xlu1 %36  ;;  %v31_v56 = vpop.permute.xlu0 %30 }
  0x75   :  { %vm47_vm3 = vcmp.eq.s32.totalorder %v2345_v42, %v31_v56  ;;  %vm49_vm4 = vcmp.eq.s32.totalorder %v2345_v42, %v2385_v55  ;;  %v2063_v55 = vld [vmem:[%s3123_s1 + $0x140] sm:$0xff] }
  0x76   :  { %vm2417_vm5 = vmpackc.low %vm47_vm3, %vm52_vm1  ;;  %v2436_v5 = vsel %vm49_vm4, 1.0, %v2193_v60  ;;  %v2440_v6 = vsel %vm47_vm3, 1.0, %v2193_v60  ;;  %1310 = vmatpush.bf16.msra.mxu3 %v2083_v37  ;;  %1274 = vmatpush.bf16.msrb.mxu1 %v2063_v55  ;;  %v2101_v55 = vld [vmem:[%s3123_s1 + $0x270] sm:$0xff] }
  0x77   :  { %v65_v19 = vrot.slane %v2440_v6, 1  ;;  %v67_v20 = vrot.slane %v2436_v5, 1  ;;  %v80_v24 = vrot.slane %v2440_v6, 2  ;;  %v82_v25 = vrot.slane %v2436_v5, 2 }
  0x78   :  { %v93_v29 = vrot.slane %v2440_v6, 3  ;;  %v95_v30 = vrot.slane %v2436_v5, 3  ;;  %v108_v39 = vrot.slane %v2436_v5, 4  ;;  %v106_v4 = vrot.slane %v2440_v6, 4 }
  0x79   :  { %v134_v37 = vrot.slane %v2436_v5, 6  ;;  %v2673_v21 = vsel %vm86_vm7, %v85_v14, %v80_v24  ;;  %v2081_v14 = vld [vmem:[%s3123_s1 + $0x1d0] sm:$0xff] }
  0x7a   :  { %v2681_v0 = vsel %vm99_vm8, %v98_v15, %v93_v29 }
  0x7c   :  { %v2455_v17 = vpop.permute.xlu1 %39  ;;  %v34_v18 = vpop.permute.xlu0 %33 }
  0x7d   :  { %vm50_vm9 = vcmp.eq.s32.totalorder %v2345_v42, %v2455_v17  ;;  %vm48_vm10 = vcmp.eq.s32.totalorder %v2345_v42, %v34_v18  ;;  %v2072_v18 = vld [vmem:[%s3123_s1 + $0x188] sm:$0xff]  ;;  %v2094_v42 = vld [vmem:[%s3123_s1 + $0x238] sm:$0xff] }
  0x7e   :  { %v2475_v26 = vsel %vm50_vm9, 1.0, %v2193_v60  ;;  %v2477_v27 = vsel %vm48_vm10, 1.0, %v2193_v60  ;;  %vm2482_vm14 = vmpackc.low %vm49_vm4, %vm48_vm10  ;;  %1293 = vmatpush.bf16.msrb.mxu2 %v2072_v18  ;;  %v2657_v18 = vsel %vm138_vm13, %v136_v16, %v137_v63 }
  0x7f   :  { %vm2011_vm15 = vmpackc.low %vm48_vm10, %vm47_vm3  ;;  %v66_v31 = vrot.slane %v2477_v27, 1  ;;  %v81_v32 = vrot.slane %v2477_v27, 2  ;;  %v94_v33 = vrot.slane %v2477_v27, 3  ;;  %v68_v34 = vrot.slane %v2475_v26, 1 }
  0x80   :  { %2012 = vmatmul.msk.bf16.vlgmr.msra.gmra.mxu0 %vm2011_vm15, %v2192_v50  ;;  %v83_v35 = vrot.slane %v2475_v26, 2  ;;  %v96_v36 = vrot.slane %v2475_v26, 3  ;;  %v107_v38 = vrot.slane %v2477_v27, 4  ;;  %vm2531_vm1 = vmpackc.low %vm51_vm0, %vm50_vm9  ;;  %v109_v58 = vrot.slane %v2475_v26, 4 }
  0x81   :  { %v2504_v41 = vsel %vm73_vm6, %v66_v31, %v67_v20  ;;  %v2510_v43 = vsel %vm73_vm6, %v65_v19, %v66_v31  ;;  %v2514_v44 = vsel %vm86_vm7, %v81_v32, %v82_v25  ;;  %v2520_v45 = vsel %vm86_vm7, %v80_v24, %v81_v32  ;;  %vm2013_vm0 = vmpackc.low %vm50_vm9, %vm49_vm4  ;;  %1327 = vmatpush.bf16.msra.mxu0 %v2094_v42  ;;  %v2102_v42 = vld [vmem:[%s3123_s1 + $0x278] sm:$0xff] }
  0x82   :  { %v159_v48 = vpack.c.bf16 %v2504_v41, %v2510_v43  ;;  %v160_v49 = vpack.c.bf16 %v2514_v44, %v2520_v45  ;;  %v2541_v51 = vsel %vm99_vm8, %v94_v33, %v95_v30  ;;  %v2547_v52 = vsel %vm99_vm8, %v93_v29, %v94_v33  ;;  %1294 = vmatpush.bf16.msrb.mxu2 %v2071_v46 }
  0x83   :  { %v161_v53 = vpack.c.bf16 %v2541_v51, %v2547_v52  ;;  %v2558_v56 = vsel %vm73_vm6, %v67_v20, %v68_v34  ;;  %v2575_v60 = vsel %vm86_vm7, %v82_v25, %v83_v35  ;;  %v2592_v3 = vsel %vm99_vm8, %v95_v30, %v96_v36  ;;  %v2082_v30 = vld [vmem:[%s3123_s1 + $0x1d8] sm:$0xff] }
  0x84   :  { %1195 = vmatmul.bf16.vlgmr.msra.gmra.mxu1 %v159_v48  ;;  %1215 = vmatmul.bf16.vlgmr.msra.gmra.mxu2 %v160_v49  ;;  %v119_v20 = vrot.slane %v2440_v6, 5  ;;  %v2608_v25 = vsel %vm112_vm11, %v107_v38, %v108_v39  ;;  %v120_v31 = vrot.slane %v2477_v27, 5  ;;  %v121_v32 = vrot.slane %v2436_v5, 5 }
  0x85   :  { %1235 = vmatmul.bf16.vlgmr.msrb.gmra.mxu3 %v161_v53  ;;  %v2621_v33 = vsel %vm99_vm8, %v97_v9, %v98_v15  ;;  %v2631_v48 = vsel %vm112_vm11, %v108_v39, %v109_v58  ;;  %v133_v49 = vrot.slane %v2477_v27, 6  ;;  %v2651_v39 = vsel %vm125_vm12, %v123_v11, %v124_v23  ;;  %1347 = vmatpush.bf16.msra.mxu1 %v2102_v42 }
  0x86   :  { %v2665_v53 = vsel %vm73_vm6, %v70_v13, %v65_v19  ;;  %v2687_v13 = vsel %vm112_vm11, %v111_v22, %v106_v4  ;;  %1311 = vmatpush.bf16.msra.mxu3 %v2082_v30  ;;  %v2694_v19 = vsel %vm125_vm12, %v120_v31, %v121_v32  ;;  %v122_v24 = vrot.slane %v2475_v26, 5 }
  0x87   :  { %v135_v15 = vrot.slane %v2475_v26, 6  ;;  %v2702_v29 = vsel %vm125_vm12, %v124_v23, %v119_v20  ;;  %v2710_v22 = vsel %vm73_vm6, %v68_v34, %v69_v7  ;;  %v2718_v30 = vsel %vm86_vm7, %v83_v35, %v84_v8 }
  0x88   :  { %v132_v23 = vrot.slane %v2440_v6, 6  ;;  %v2723_v59 = vsel %vm138_vm13, %v133_v49, %v134_v37  ;;  %v2731_v7 = vsel %vm99_vm8, %v96_v36, %v97_v9  ;;  %v2737_v8 = vsel %vm112_vm11, %v106_v4, %v107_v38 }
  0x89   :  { %v2743_v34 = vsel %vm112_vm11, %v109_v58, %v110_v10  ;;  %v2747_v35 = vsel %vm125_vm12, %v121_v32, %v122_v24  ;;  %v2751_v9 = vsel %vm125_vm12, %v119_v20, %v120_v31  ;;  %v2761_v4 = vsel %vm138_vm13, %v134_v37, %v135_v15  ;;  %v2080_v10 = vld [vmem:[%s3123_s1 + $0x1c8] sm:$0xff]  ;;  %1348 = vmatpush.bf16.msra.mxu1 %v2101_v55  ;;  %v2089_v55 = vld [vmem:[%s3123_s1 + $0x210] sm:$0xff] }
  0x8a   :  { %v2755_v36 = vsel %vm138_vm13, %v132_v23, %v133_v49  ;;  %1312 = vmatpush.bf16.msra.mxu3 %v2081_v14  ;;  %v2770_v58 = vsel %vm125_vm12, %v122_v24, %v123_v11  ;;  %v2776_v20 = vsel %vm138_vm13, %v135_v15, %v136_v16  ;;  %v182_v32 = vpack.c.bf16 %v2566_v57, %v2710_v22  ;;  %v2079_v14 = vld [vmem:[%s3123_s1 + $0x1c0] sm:$0xff]  ;;  %v2104_v37 = vld [vmem:[%s3123_s1 + $0x288] sm:$0xff] }
  0x8b   :  { %v2790_v11 = vsel %vm138_vm13, %v137_v63, %v132_v23  ;;  %v183_v16 = vpack.c.bf16 %v2583_v62, %v2718_v30  ;;  %v184_v40 = vpack.c.bf16 %v2621_v33, %v2731_v7  ;;  %v197_v46 = vpack.c.bf16 %v2510_v43, %v2665_v53  ;;  %v2093_v23 = vld [vmem:[%s3123_s1 + $0x230] sm:$0xff] }
  0x8c   :  { %v198_v17 = vpack.c.bf16 %v2520_v45, %v2673_v21  ;;  %v199_v63 = vpack.c.bf16 %v2547_v52, %v2681_v0  ;;  %v185_v49 = vpack.c.bf16 %v2643_v12, %v2743_v34  ;;  %v174_v31 = vpack.c.bf16 %v2710_v22, %v2558_v56  ;;  %1328 = vmatpush.bf16.msra.mxu0 %v2093_v23  ;;  %v2090_v23 = vld [vmem:[%s3123_s1 + $0x218] sm:$0xff] }
  0x8d   :  { %v175_v38 = vpack.c.bf16 %v2718_v30, %v2575_v60  ;;  %v176_v24 = vpack.c.bf16 %v2731_v7, %v2592_v3  ;;  %v189_v42 = vpack.c.bf16 %v2665_v53, %v2566_v57  ;;  %v147_v15 = vrot.slane %v2436_v5, 7 }
  0x8e   :  { %1313 = vmatpush.bf16.msra.mxu3 %v2080_v10  ;;  %v2110_v10 = vld [vmem:[%s3123_s1 + $0x2b8] sm:$0xff]  ;;  %v193_v28 = vpack.c.bf16 %v2702_v29, %v2651_v39  ;;  %v3136_v47 = vpack.c.bf16 %v2592_v3, %v2541_v51  ;;  %v2135_v51 = vld [vmem:[%s3123_s1 + $0x380] sm:$0xff]  ;;  %v3138_v45 = vpack.c.bf16 %v2747_v35, %v2694_v19  ;;  %v3139_v52 = vpack.c.bf16 %v2761_v4, %v2723_v59 }
  0x8f   :  { %1367 = vmatpush.bf16.msra.mxu2 %v2110_v10  ;;  %v2108_v10 = vld [vmem:[%s3123_s1 + $0x2a8] sm:$0xff]  ;;  %vm1469_vm3 = vcmask 15360   ;;  %vm1484_vm4 = vcmask 1040384  }
  0x90   :  { %2014 = vmatmul.msk.bf16.gmra.mxu0 %vm2013_vm0, %v2192_v50 }
  0x92   :  { %1314 = vmatpush.bf16.msra.mxu3 %v2079_v14  ;;  %v2091_v14 = vld [vmem:[%s3123_s1 + $0x220] sm:$0xff] }
  0x94   :  { %1199 = vmatmul.bf16.gmra.mxu1 %v174_v31  ;;  %1219 = vmatmul.bf16.gmra.mxu2 %v175_v38  ;;  %v2092_v38 = vld [vmem:[%s3123_s1 + $0x228] sm:$0xff]  ;;  %v2109_v31 = vld [vmem:[%s3123_s1 + $0x2b0] sm:$0xff] }
  0x95   :  { %1239 = vmatmul.bf16.gmra.mxu3 %v176_v24  ;;  %1329 = vmatpush.bf16.msra.mxu0 %v2092_v38  ;;  %v162_v24 = vpack.c.bf16 %v2608_v25, %v2737_v8  ;;  %v190_v38 = vpack.c.bf16 %v2673_v21, %v2583_v62 }
  0x96   :  { %1368 = vmatpush.bf16.msra.mxu2 %v2109_v31  ;;  %v191_v31 = vpack.c.bf16 %v2681_v0, %v2621_v33 }
  0x99   :  { %1330 = vmatpush.bf16.msra.mxu0 %v2091_v14  ;;  %v2100_v14 = vld [vmem:[%s3123_s1 + $0x268] sm:$0xff] }
  0x9a   :  { %1369 = vmatpush.bf16.msra.mxu2 %v2108_v10  ;;  %v2107_v10 = vld [vmem:[%s3123_s1 + $0x2a0] sm:$0xff]  ;;  %1349 = vmatpush.bf16.msra.mxu1 %v2100_v14  ;;  %v146_v14 = vrot.slane %v2477_v27, 7 }
  0x9c   :  { %v155_v27 = vsel %vm151_vm2, %v146_v14, %v147_v15 }
  0x9d   :  { %1331 = vmatpush.bf16.msra.mxu0 %v2090_v23  ;;  %v2088_v23 = vld [vmem:[%s3123_s1 + $0x208] sm:$0xff] }
  0x9e   :  { %1370 = vmatpush.bf16.msra.mxu2 %v2107_v10  ;;  %v177_v10 = vpack.c.bf16 %v2743_v34, %v2631_v48 }
  0xa0   :  { %1255 = vmatmul.bf16.vlgmr.msrb.gmra.mxu0 %v162_v24  ;;  %v2118_v24 = vld [vmem:[%s3123_s1 + $0x2f8] sm:$0xff] }
  0xa1   :  { %1332 = vmatpush.bf16.msra.mxu0 %v2089_v55  ;;  %1387 = vmatpush.bf16.msrb.mxu3 %v2118_v24  ;;  %v2087_v55 = vld [vmem:[%s3123_s1 + $0x200] sm:$0xff]  ;;  %v2116_v24 = vld [vmem:[%s3123_s1 + $0x2e8] sm:$0xff] }
  0xa4   :  { %1203 = vmatmul.bf16.gmra.mxu1 %v189_v42  ;;  %1223 = vmatmul.bf16.gmra.mxu2 %v190_v38  ;;  %v2099_v42 = vld [vmem:[%s3123_s1 + $0x260] sm:$0xff]  ;;  %v2117_v38 = vld [vmem:[%s3123_s1 + $0x2f0] sm:$0xff] }
  0xa5   :  { %1243 = vmatmul.bf16.gmra.mxu3 %v191_v31  ;;  %v2106_v31 = vld [vmem:[%s3123_s1 + $0x298] sm:$0xff]  ;;  %1333 = vmatpush.bf16.msra.mxu0 %v2088_v23  ;;  %v145_v23 = vrot.slane %v2440_v6, 7  ;;  %v2132_v6 = vld [vmem:[%s3123_s1 + $0x368] sm:$0xff] }
  0xa6   :  { %1350 = vmatpush.bf16.msra.mxu1 %v2099_v42  ;;  %1388 = vmatpush.bf16.msrb.mxu3 %v2117_v38  ;;  %v2098_v42 = vld [vmem:[%s3123_s1 + $0x258] sm:$0xff]  ;;  %v2105_v38 = vld [vmem:[%s3123_s1 + $0x290] sm:$0xff] }
  0xa7   :  { %1371 = vmatpush.bf16.msra.mxu2 %v2106_v31  ;;  %v156_v5 = vsel %vm151_vm2, %v145_v23, %v146_v14  ;;  %v163_v31 = vpack.c.bf16 %v2694_v19, %v2751_v9  ;;  %v2115_v14 = vld [vmem:[%s3123_s1 + $0x2e0] sm:$0xff] }
  0xa9   :  { %1334 = vmatpush.bf16.msra.mxu0 %v2087_v55  ;;  %v164_v55 = vpack.c.bf16 %v2723_v59, %v2755_v36  ;;  %v3141_v59 = vpack.c.bf16 %v2651_v39, %v2770_v58  ;;  %v3144_v39 = vpack.c.bf16 %v2755_v36, %v2790_v11 }
  0xaa   :  { %1389 = vmatpush.bf16.msrb.mxu3 %v2116_v24  ;;  %1351 = vmatpush.bf16.msra.mxu1 %v2098_v42  ;;  %v165_v24 = vpack.c.bf16 %v155_v27, %v156_v5  ;;  %v2114_v42 = vld [vmem:[%s3123_s1 + $0x2d8] sm:$0xff]  ;;  %v2096_v27 = vld [vmem:[%s3123_s1 + $0x248] sm:$0xff]  ;;  %v2103_v5 = vld [vmem:[%s3123_s1 + $0x280] sm:$0xff] }
  0xab   :  { %1372 = vmatpush.bf16.msra.mxu2 %v2105_v38  ;;  %v2113_v38 = vld [vmem:[%s3123_s1 + $0x2d0] sm:$0xff] }
  0xae   :  { %1390 = vmatpush.bf16.msrb.mxu3 %v2115_v14  ;;  %v2112_v14 = vld [vmem:[%s3123_s1 + $0x2c8] sm:$0xff] }
  0xaf   :  { %1373 = vmatpush.bf16.msra.mxu2 %v2104_v37  ;;  %v192_v37 = vpack.c.bf16 %v2687_v13, %v2643_v12 }
  0xb0   :  { %1259 = vmatmul.bf16.gmra.mxu0 %v177_v10  ;;  %v2097_v10 = vld [vmem:[%s3123_s1 + $0x250] sm:$0xff] }
  0xb1   :  { %1352 = vmatpush.bf16.msra.mxu1 %v2097_v10 }
  0xb2   :  { %1391 = vmatpush.bf16.msrb.mxu3 %v2114_v42  ;;  %v178_v42 = vpack.c.bf16 %v2770_v58, %v2747_v35 }
  0xb3   :  { %1374 = vmatpush.bf16.msra.mxu2 %v2103_v5 }
  0xb4   :  { %1275 = vmatmul.bf16.vlgmr.msrb.gmra.mxu1 %v163_v31  ;;  %1295 = vmatmul.bf16.vlgmr.msrb.gmra.mxu2 %v164_v55  ;;  %v148_v31 = vrot.slane %v2475_v26, 7  ;;  %v149_v55 = vrot.slane %v2400_v61, 7  ;;  %v2126_v26 = vld [vmem:[%s3123_s1 + $0x338] sm:$0xff]  ;;  %v2095_v61 = vld [vmem:[%s3123_s1 + $0x240] sm:$0xff] }
  0xb5   :  { %1315 = vmatmul.bf16.vlgmr.msra.gmra.mxu3 %v165_v24  ;;  %1353 = vmatpush.bf16.msra.mxu1 %v2096_v27  ;;  %v179_v27 = vpack.c.bf16 %v2776_v20, %v2761_v4  ;;  %v3142_v4 = vpack.c.bf16 %v2657_v18, %v2776_v20 }
  0xb6   :  { %1392 = vmatpush.bf16.msrb.mxu3 %v2113_v38  ;;  %v153_v24 = vsel %vm151_vm2, %v148_v31, %v149_v55  ;;  %v154_v10 = vsel %vm151_vm2, %v147_v15, %v148_v31  ;;  %1407 = vmatpush.bf16.msrb.mxu0 %v2126_v26  ;;  %v2111_v15 = vld [vmem:[%s3123_s1 + $0x2c0] sm:$0xff]  ;;  %v2125_v38 = vld [vmem:[%s3123_s1 + $0x330] sm:$0xff]  ;;  %v2142_v31 = vld [vmem:[%s3123_s1 + $0x3b8] sm:$0xff] }
  0xb7   :  { %v180_v5 = vpack.c.bf16 %v153_v24, %v154_v10  ;;  %1447 = vmatpush.bf16.msrb.mxu2 %v2142_v31  ;;  %v2141_v24 = vld [vmem:[%s3123_s1 + $0x3b0] sm:$0xff]  ;;  %v2123_v26 = vld [vmem:[%s3123_s1 + $0x320] sm:$0xff] }
  0xb8   :  { %v2133_v10 = vld [vmem:[%s3123_s1 + $0x370] sm:$0xff]  ;;  %v2131_v31 = vld [vmem:[%s3123_s1 + $0x360] sm:$0xff] }
  0xb9   :  { %1354 = vmatpush.bf16.msra.mxu1 %v2095_v61  ;;  %v150_v61 = vrot.slane %v2423_v2, 7  ;;  %v2140_v2 = vld [vmem:[%s3123_s1 + $0x3a8] sm:$0xff] }
  0xba   :  { %1393 = vmatpush.bf16.msrb.mxu3 %v2112_v14  ;;  %1408 = vmatpush.bf16.msrb.mxu0 %v2125_v38  ;;  %v2124_v14 = vld [vmem:[%s3123_s1 + $0x328] sm:$0xff] }
  0xbb   :  { %1448 = vmatpush.bf16.msrb.mxu2 %v2141_v24  ;;  %v2120_v38 = vld [vmem:[%s3123_s1 + $0x308] sm:$0xff]  ;;  %v2130_v24 = vld [vmem:[%s3123_s1 + $0x358] sm:$0xff] }
  0xbe   :  { %1394 = vmatpush.bf16.msrb.mxu3 %v2111_v15  ;;  %1409 = vmatpush.bf16.msrb.mxu0 %v2124_v14  ;;  %v2122_v15 = vld [vmem:[%s3123_s1 + $0x318] sm:$0xff] }
  0xbf   :  { %1449 = vmatpush.bf16.msrb.mxu2 %v2140_v2  ;;  %v2138_v14 = vld [vmem:[%s3123_s1 + $0x398] sm:$0xff] }
  0xc0   :  { %1263 = vmatmul.bf16.gmra.mxu0 %v192_v37  ;;  %v2134_v37 = vld [vmem:[%s3123_s1 + $0x378] sm:$0xff] }
  0xc1   :  { %1427 = vmatpush.bf16.msrb.mxu1 %v2134_v37  ;;  %v2119_v37 = vld [vmem:[%s3123_s1 + $0x300] sm:$0xff] }
  0xc2   :  { %1410 = vmatpush.bf16.msrb.mxu0 %v2123_v26  ;;  %v3134_v26 = vpack.c.bf16 %v2558_v56, %v2504_v41  ;;  %v2127_v56 = vld [vmem:[%s3123_s1 + $0x340] sm:$0xff] }
  0xc4   :  { %1279 = vmatmul.bf16.gmra.mxu1 %v178_v42  ;;  %1299 = vmatmul.bf16.gmra.mxu2 %v179_v27  ;;  %v152_v42 = vsel %vm151_vm2, %v149_v55, %v150_v61  ;;  %v157_v27 = vsel %vm151_vm2, %v150_v61, %v145_v23  ;;  %v2139_v23 = vld [vmem:[%s3123_s1 + $0x3a0] sm:$0xff]  ;;  %v3135_v61 = vpack.c.bf16 %v2575_v60, %v2514_v44  ;;  %v2128_v44 = vld [vmem:[%s3123_s1 + $0x348] sm:$0xff] }
  0xc5   :  { %1319 = vmatmul.bf16.gmra.mxu3 %v180_v5  ;;  %1428 = vmatpush.bf16.msrb.mxu1 %v2133_v10  ;;  %v194_v5 = vpack.c.bf16 %v2790_v11, %v2657_v18  ;;  %v195_v55 = vpack.c.bf16 %v157_v27, %v152_v42  ;;  %v2137_v10 = vld [vmem:[%s3123_s1 + $0x390] sm:$0xff]  ;;  %v2136_v27 = vld [vmem:[%s3123_s1 + $0x388] sm:$0xff] }
  0xc6   :  { %1411 = vmatpush.bf16.msrb.mxu0 %v2122_v15  ;;  %1450 = vmatpush.bf16.msrb.mxu2 %v2139_v23  ;;  %v2129_v42 = vld [vmem:[%s3123_s1 + $0x350] sm:$0xff]  ;;  %v3137_v15 = vpack.c.bf16 %v2631_v48, %v2608_v25 }
  0xc9   :  { %1429 = vmatpush.bf16.msrb.mxu1 %v2132_v6 }
  0xca   :  { %1412 = vmatpush.bf16.msrb.mxu0 %v2121_v54  ;;  %1451 = vmatpush.bf16.msrb.mxu2 %v2138_v14 }
  0xcd   :  { %1430 = vmatpush.bf16.msrb.mxu1 %v2131_v31 }
  0xce   :  { %1413 = vmatpush.bf16.msrb.mxu0 %v2120_v38  ;;  %1452 = vmatpush.bf16.msrb.mxu2 %v2137_v10 }
  0xd0   :  { %2018 = vmatmul.msk.bf16.vlgmr.msra.gmra.mxu0 %vm2482_vm14, %v2192_v50 }
  0xd1   :  { %1431 = vmatpush.bf16.msrb.mxu1 %v2130_v24 }
  0xd2   :  { %1414 = vmatpush.bf16.msrb.mxu0 %v2119_v37  ;;  %1453 = vmatpush.bf16.msrb.mxu2 %v2136_v27 }
  0xd4   :  { %1283 = vmatmul.bf16.gmra.mxu1 %v193_v28  ;;  %1303 = vmatmul.bf16.gmra.mxu2 %v194_v5 }
  0xd5   :  { %1323 = vmatmul.bf16.gmra.mxu3 %v195_v55  ;;  %1432 = vmatpush.bf16.msrb.mxu1 %v2129_v42 }
  0xd6   :  { %1454 = vmatpush.bf16.msrb.mxu2 %v2135_v51 }
  0xd9   :  { %1433 = vmatpush.bf16.msrb.mxu1 %v2128_v44 }
  0xdd   :  { %1434 = vmatpush.bf16.msrb.mxu1 %v2127_v56 }
  0xe0   :  { %2020 = vmatmul.msk.bf16.gmra.mxu0 %vm2531_vm1, %v2192_v50 }
  0xe4   :  { %1355 = vmatmul.bf16.vlgmr.msra.gmra.mxu1 %v3134_v26  ;;  %1375 = vmatmul.bf16.vlgmr.msra.gmra.mxu2 %v3135_v61 }
  0xe5   :  { %1395 = vmatmul.bf16.vlgmr.msrb.gmra.mxu3 %v3136_v47 }
  0xec   :  { %v1184_v41 = vpop.f32.mrf.mxu3 }
  0xf0   :  { %2022 = vmatmul.msk.bf16.gmra.mxu0 %vm2417_vm5, %v2192_v50  ;;  %v2161_v50 = vld [vmem:[%s3124_s2] ss:$0 sm:$0xff]  ;;  %vm1507_vm5 = vcmask 9216  }
  0xf4   :  { %1359 = vmatmul.bf16.gmra.mxu1 %v182_v32  ;;  %1379 = vmatmul.bf16.gmra.mxu2 %v183_v16  ;;  %v1185_v60 = vpop.f32.mrf.mxu3 }
  0xf5   :  { %1399 = vmatmul.bf16.gmra.mxu3 %v184_v40 }
  0xfd   :  { %v1176_v1 = vpop.f32.mrf.mxu0 }
  0xfe   :  { %v1177_v3 = vadd.f32 %v2161_v50, %v1176_v1 }
 0x100   :  { %1415 = vmatmul.bf16.vlgmr.msrb.gmra.mxu0 %v3137_v15 }
 0x101   :  { %v1196_v57 = vpop.f32.mrf.mxu1 }
 0x102   :  { %v1197_v22 = vadd.f32 %v1196_v57, %v1177_v3 }
 0x104   :  { %1363 = vmatmul.bf16.gmra.mxu1 %v197_v46  ;;  %1383 = vmatmul.bf16.gmra.mxu2 %v198_v17 }
 0x105   :  { %v1178_v62 = vpop.f32.mrf.mxu0  ;;  %1403 = vmatmul.bf16.gmra.mxu3 %v199_v63 }
 0x107   :  { %v1216_v33 = vpop.f32.mrf.mxu2 }
 0x108   :  { %v1217_v30 = vadd.f32 %v1216_v33, %v1197_v22  ;;  %v1236_v7 = vpop.f32.mrf.mxu3 }
 0x109   :  { %v1198_v25 = vpop.f32.mrf.mxu1 }
 0x10a   :  { %v1237_v48 = vadd.f32 %v1236_v7, %v1217_v30 }
 0x10d   :  { %v1180_v32 = vpop.f32.mrf.mxu0 }
 0x10f   :  { %v1218_v16 = vpop.f32.mrf.mxu2 }
 0x110   :  { %v1238_v40 = vpop.f32.mrf.mxu3  ;;  %1419 = vmatmul.bf16.gmra.mxu0 %v185_v49  ;;  %v3140_v49 = vpack.c.bf16 %v2737_v8, %v2687_v13  ;;  %v3143_v8 = vpack.c.bf16 %v2751_v9, %v2702_v29 }
 0x111   :  { %v1200_v43 = vpop.f32.mrf.mxu1 }
 0x114   :  { %1435 = vmatmul.bf16.vlgmr.msrb.gmra.mxu1 %v3138_v45  ;;  %1455 = vmatmul.bf16.vlgmr.msrb.gmra.mxu2 %v3139_v52 }
 0x115   :  { %v1181_v0 = vpop.f32.mrf.mxu0 }
 0x116   :  { %v1182_v53 = vadd.f32 %v2161_v50, %v1181_v0 }
 0x117   :  { %v1220_v21 = vpop.f32.mrf.mxu2 }
 0x118   :  { %v1240_v46 = vpop.f32.mrf.mxu3 }
 0x119   :  { %v1201_v17 = vpop.f32.mrf.mxu1 }
 0x11a   :  { %v1202_v63 = vadd.f32 %v1201_v17, %v1182_v53 }
 0x11d   :  { %v1256_v2 = vpop.f32.mrf.mxu0 }
 0x11e   :  { %v1257_v28 = vadd.f32 %v1256_v2, %v1237_v48 }
 0x11f   :  { %v1221_v5 = vpop.f32.mrf.mxu2 }
 0x120   :  { %v1222_v12 = vadd.f32 %v1221_v5, %v1202_v63  ;;  %v1241_v34 = vpop.f32.mrf.mxu3  ;;  %1423 = vmatmul.bf16.gmra.mxu0 %v3140_v49 }
 0x121   :  { %v1204_v19 = vpop.f32.mrf.mxu1 }
 0x122   :  { %v1242_v35 = vadd.f32 %v1241_v34, %v1222_v12 }
 0x124   :  { %1439 = vmatmul.bf16.gmra.mxu1 %v3141_v59  ;;  %1459 = vmatmul.bf16.gmra.mxu2 %v3142_v4 }
 0x125   :  { %v1258_v55 = vpop.f32.mrf.mxu0 }
 0x127   :  { %v1224_v54 = vpop.f32.mrf.mxu2 }
 0x128   :  { %v1244_v6 = vpop.f32.mrf.mxu3 }
 0x129   :  { %v1205_v23 = vpop.f32.mrf.mxu1 }
 0x12d   :  { %v1260_v38 = vpop.f32.mrf.mxu0 }
 0x12f   :  { %v1225_v31 = vpop.f32.mrf.mxu2 }
 0x130   :  { %v1245_v37 = vpop.f32.mrf.mxu3 }
 0x131   :  { %v1276_v14 = vpop.f32.mrf.mxu1 }
 0x132   :  { %v1277_v13 = vadd.f32 %v1276_v14, %v1257_v28 }
 0x134   :  { %1443 = vmatmul.bf16.gmra.mxu1 %v3143_v8  ;;  %1463 = vmatmul.bf16.gmra.mxu2 %v3144_v39 }
 0x135   :  { %v1261_v58 = vpop.f32.mrf.mxu0 }
 0x136   :  { %v1262_v18 = vadd.f32 %v1261_v58, %v1242_v35 }
 0x137   :  { %v1296_v20 = vpop.f32.mrf.mxu2 }
 0x138   :  { %v1297_v24 = vadd.f32 %v1296_v20, %v1277_v13  ;;  %v1316_v10 = vpop.f32.mrf.mxu3  ;;  %v2194_v20 = vmov 1  }
 0x139   :  { %v1278_v26 = vpop.f32.mrf.mxu1  ;;  %2159 = vset.pattern.permute.xlu1 %v2194_v20 }
 0x13a   :  { %v1317_v61 = vadd.f32 %v1316_v10, %v1297_v24 }
 0x13d   :  { %v1264_v47 = vpop.f32.mrf.mxu0 }
 0x13f   :  { %v1298_v42 = vpop.f32.mrf.mxu2 }
 0x140   :  { %v1318_v27 = vpop.f32.mrf.mxu3 }
 0x141   :  { %v1280_v41 = vpop.f32.mrf.mxu1 }
 0x145   :  { %v1265_v44 = vpop.f32.mrf.mxu0 }
 0x147   :  { %v1300_v51 = vpop.f32.mrf.mxu2 }
 0x148   :  { %v1320_v56 = vpop.f32.mrf.mxu3 }
 0x149   :  { %v1281_v29 = vpop.f32.mrf.mxu1 }
 0x14a   :  { %v1282_v9 = vadd.f32 %v1281_v29, %v1262_v18 }
 0x14d   :  { %v1336_v60 = vpop.f32.mrf.mxu0 }
 0x14e   :  { %v1337_v50 = vadd.f32 %v1336_v60, %v1317_v61 }
 0x14f   :  { %v1301_v36 = vpop.f32.mrf.mxu2 }
 0x150   :  { %v1302_v11 = vadd.f32 %v1301_v36, %v1282_v9  ;;  %v1321_v1 = vpop.f32.mrf.mxu3 }
 0x151   :  { %v1284_v3 = vpop.f32.mrf.mxu1 }
 0x152   :  { %v1322_v15 = vadd.f32 %v1321_v1, %v1302_v11 }
 0x155   :  { %v1338_v57 = vpop.f32.mrf.mxu0 }
 0x157   :  { %v1304_v22 = vpop.f32.mrf.mxu2 }
 0x158   :  { %v1324_v62 = vpop.f32.mrf.mxu3 }
 0x159   :  { %v1285_v33 = vpop.f32.mrf.mxu1 }
 0x15d   :  { %v1340_v30 = vpop.f32.mrf.mxu0 }
 0x15f   :  { %v1305_v7 = vpop.f32.mrf.mxu2 }
 0x160   :  { %v1325_v25 = vpop.f32.mrf.mxu3 }
 0x161   :  { %v1356_v48 = vpop.f32.mrf.mxu1 }
 0x162   :  { %v1357_v32 = vadd.f32 %v1356_v48, %v1337_v50 }
 0x165   :  { %v1341_v16 = vpop.f32.mrf.mxu0 }
 0x166   :  { %v1342_v10 = vadd.f32 %v1341_v16, %v1322_v15 }
 0x167   :  { %v1376_v40 = vpop.f32.mrf.mxu2 }
 0x168   :  { %v1377_v43 = vadd.f32 %v1376_v40, %v1357_v32  ;;  %v1396_v45 = vpop.f32.mrf.mxu3 }
 0x169   :  { %v1358_v52 = vpop.f32.mrf.mxu1 }
 0x16a   :  { %v1397_v0 = vadd.f32 %v1396_v45, %v1377_v43  ;;  %v2163_v52 = vld [vmem:[%s3125_s3] ss:$0 sm:$0xff] }
 0x16d   :  { %v1344_v21 = vpop.f32.mrf.mxu0 }
 0x16e   :  { %v2164_v21 = vld [vmem:[%s3126_s4] ss:$0 sm:$0xff] }
 0x16f   :  { %v1378_v53 = vpop.f32.mrf.mxu2 }
 0x170   :  { %v1398_v46 = vpop.f32.mrf.mxu3 }
 0x171   :  { %v1360_v17 = vpop.f32.mrf.mxu1 }
 0x175   :  { %v1345_v63 = vpop.f32.mrf.mxu0 }
 0x177   :  { %v1380_v2 = vpop.f32.mrf.mxu2 }
 0x178   :  { %v1400_v28 = vpop.f32.mrf.mxu3 }
 0x179   :  { %v1361_v5 = vpop.f32.mrf.mxu1 }
 0x17a   :  { %v1362_v26 = vadd.f32 %v1361_v5, %v1342_v10 }
 0x17d   :  { %v1416_v12 = vpop.f32.mrf.mxu0 }
 0x17e   :  { %v1417_v13 = vadd.f32 %v1416_v12, %v1397_v0  ;;  %v2162_v0 = vld [vmem:[%s3125_s3 + $0x1] ss:$0 sm:$0xff] }
 0x17f   :  { %v1381_v34 = vpop.f32.mrf.mxu2 }
 0x180   :  { %v1401_v49 = vpop.f32.mrf.mxu3  ;;  %v1382_v42 = vadd.f32 %v1381_v34, %v1362_v26 }
 0x181   :  { %v1364_v19 = vpop.f32.mrf.mxu1 }
 0x182   :  { %v1402_v51 = vadd.f32 %v1401_v49, %v1382_v42 }
 0x185   :  { %v1418_v35 = vpop.f32.mrf.mxu0 }
 0x187   :  { %v1384_v59 = vpop.f32.mrf.mxu2 }
 0x188   :  { %v1404_v4 = vpop.f32.mrf.mxu3 }
 0x189   :  { %v1365_v55 = vpop.f32.mrf.mxu1 }
 0x18d   :  { %v1420_v54 = vpop.f32.mrf.mxu0 }
 0x18f   :  { %v1385_v6 = vpop.f32.mrf.mxu2 }
 0x190   :  { %v1405_v23 = vpop.f32.mrf.mxu3 }
 0x191   :  { %v1436_v38 = vpop.f32.mrf.mxu1 }
 0x192   :  { %v1437_v39 = vadd.f32 %v1436_v38, %v1417_v13 }
 0x195   :  { %v1421_v31 = vpop.f32.mrf.mxu0 }
 0x196   :  { %v1422_v29 = vadd.f32 %v1421_v31, %v1402_v51 }
 0x197   :  { %v1456_v37 = vpop.f32.mrf.mxu2 }
 0x198   :  { %v1457_v18 = vadd.f32 %v1456_v37, %v1437_v39 }
 0x199   :  { %v1438_v14 = vpop.f32.mrf.mxu1 }
 0x19a   :  { %v1467_v61 = vmax.f32 %v1457_v18, 0.0 }
 0x19c   :  { %v1470_v41 = vsel %vm1469_vm3, %v1467_v61, -inf }
 0x19d   :  { %v1424_v8 = vpop.f32.mrf.mxu0  ;;  %v1471_v56 = vrot.slane %v1470_v41, 4 }
 0x19f   :  { %v1458_v58 = vpop.f32.mrf.mxu2  ;;  %v1472_v60 = vmax.f32 %v1470_v41, %v1471_v56 }
 0x1a1   :  { %v1440_v24 = vpop.f32.mrf.mxu1  ;;  %v1473_v3 = vrot.slane %v1472_v60, 2 }
 0x1a3   :  { %v1474_v22 = vmax.f32 %v1472_v60, %v1473_v3 }
 0x1a5   :  { %v1425_v47 = vpop.f32.mrf.mxu0  ;;  %v1475_v25 = vrot.slane %v1474_v22, 1 }
 0x1a7   :  { %v1460_v27 = vpop.f32.mrf.mxu2  ;;  %v1476_v40 = vmax.f32 %v1474_v22, %v1475_v25 }
 0x1a9   :  { %v1441_v44 = vpop.f32.mrf.mxu1 }
 0x1aa   :  { %v1442_v9 = vadd.f32 %v1441_v44, %v1422_v29 }
 0x1af   :  { %v1461_v50 = vpop.f32.mrf.mxu2 }
 0x1b0   :  { %v1462_v36 = vadd.f32 %v1461_v50, %v1442_v9 }
 0x1b1   :  { %v1444_v11 = vpop.f32.mrf.mxu1 }
 0x1b2   :  { %v1468_v1 = vmax.f32 %v1462_v36, 0.0 }
 0x1b4   :  { %v1477_v15 = vsel %vm1469_vm3, %v1468_v1, -inf }
 0x1b5   :  { %v1478_v57 = vrot.slane %v1477_v15, 4 }
 0x1b7   :  { %v1479_v62 = vmax.f32 %v1477_v15, %v1478_v57  ;;  %v1464_v33 = vpop.f32.mrf.mxu2 }
 0x1b9   :  { %v1480_v30 = vrot.slane %v1479_v62, 2  ;;  %v1445_v7 = vpop.f32.mrf.mxu1 }
 0x1bb   :  { %v1481_v48 = vmax.f32 %v1479_v62, %v1480_v30 }
 0x1bd   :  { %v1482_v32 = vrot.slane %v1481_v48, 1 }
 0x1bf   :  { %v1465_v16 = vpop.f32.mrf.mxu2  ;;  %v1483_v43 = vmax.f32 %v1481_v48, %v1482_v32 }
 0x1c1   :  { %v1485_v45 = vsel %vm1484_vm4, %v1476_v40, %v1483_v43 }
 0x1c2   :  { %1501 = vperm.xlu1 %2159, %v1485_v45   ;;  %1490 = vperm.xlu0 %2156, %v1485_v45  }
 0x1ca   :  { %2160 = vset.pattern.permute.xlu0 %v2194_v20 }
 0x234   :  { %v1502_v53 = vpop.permute.xlu1 %1501  ;;  %v1491_v46 = vpop.permute.xlu0 %1490 }
 0x235   :  { %v1494_v17 = vmul.f32 %v2163_v52, %v1491_v46  ;;  %v1505_v63 = vmul.f32 %v2162_v0, %v1502_v53 }
 0x237   :  { %v1498_v2 = vadd.f32 %v2164_v21, %v1494_v17 }
 0x239   :  { %v1506_v28 = vadd.f32 %v1505_v63, %v1498_v2 }
 0x23b   :  { %1508 = vst.msk [vmem:[#allocation2] sm:$0x3] %vm1507_vm5, %v1506_v28 }
 0x23c   :  { %1519 = dma.vmem_to_hbm [thread:$0]  %s1515_s18, 32, %s1517_s21, [#allocation3]  }
 0x23d   :  { %2189 = dma.done.wait [#allocation3], 32  }
 0x23e   :  { %2190 = vsyncadd [#allocation3], 4294967264 }
 0x23f   :  { %1524 = vsyncpa [#allocation3], 1 }

</bundles_post_ra>
